<compile_context>
chip_gen: v7x
topology: tpu7x:2x2x1
jax: 0.10.0
libtpu: 0.0.40
codegen_flags: <defaults>
</compile_context>

<pallas_src>
import functools

import jax
import jax.numpy as jnp
from jax import lax
from jax.experimental import pallas as pl
from jax.experimental.pallas import tpu as pltpu


# ----------------------------- kernel bodies ------------------------------------------


def _depthwise_tile(xp_ref, dww_ref, dwb_ref, *, ksize, stride, th, wo):
    """Depthwise KxK conv (+ bias) for one tile of `th` output rows.

    xp_ref : (1, Hp, Wp, C) zero-padded input block (full image, resident across h-tiles)
    dww_ref: (K*K, C) depthwise weights (resident)
    dwb_ref: (1, C)   depthwise bias (resident)
    Returns (th, wo, C) float32.  Each tap is read directly from the ref so only one tap
    plus the accumulator is live at a time.
    """
    c = xp_ref.shape[-1]
    h0 = pl.program_id(1) * (th * stride)
    dww = dww_ref[...]                                     # (K*K, C), tiny & resident
    acc = jnp.zeros((th, wo, c), jnp.float32)
    for kh in range(ksize):
        for kw in range(ksize):
            if stride == 1:
                patch = xp_ref[0, pl.ds(h0 + kh, th), pl.ds(kw, wo), :]
            else:
                # stride handled at the indexing level (no strided slicing of values)
                patch = xp_ref[0, pl.ds(h0 + kh, th, stride=stride),
                               pl.ds(kw, wo, stride=stride), :]
            acc = acc + patch * dww[kh * ksize + kw, :]
    return acc + dwb_ref[...]                              # (1, C) broadcast


def dp_stats_kernel(xp_ref, dww_ref, dwb_ref, stats_ref, *, ksize, stride, th, wo):
    """Pass 1: per-tile partial BN statistics (sum, sum of squares) per channel."""
    z = _depthwise_tile(xp_ref, dww_ref, dwb_ref,
                        ksize=ksize, stride=stride, th=th, wo=wo)
    z2 = z.reshape(th * wo, -1)
    stats_ref[0, 0, 0:1, :] = jnp.sum(z2, axis=0, keepdims=True)
    stats_ref[0, 0, 1:2, :] = jnp.sum(z2 * z2, axis=0, keepdims=True)


def dp_main_kernel(xp_ref, dww_ref, dwb_ref, s_ref, b_ref, pww_ref, pwb_ref, o_ref,
                   *, ksize, stride, th, wo, matmul_dtype, use_mxu):
    """Pass 2: depthwise (recomputed) -> folded BN affine -> ReLU -> 1x1 conv -> ReLU."""
    z = _depthwise_tile(xp_ref, dww_ref, dwb_ref,
                        ksize=ksize, stride=stride, th=th, wo=wo)
    # BatchNorm folded into a single per-channel multiply-add, then ReLU.
    y = jnp.maximum(z * s_ref[...] + b_ref[...], 0.0)      # (th, wo, Cin), f32
    cin = xp_ref.shape[-1]
    cout_p = o_ref.shape[-1]
    y2d = y.reshape(th * wo, cin)                          # cheap: last dim unchanged
    if use_mxu:
        out = jnp.dot(y2d.astype(matmul_dtype), pww_ref[...].astype(matmul_dtype),
                      preferred_element_type=jnp.float32)
    else:
        # Tiny Cin: the MXU would run at <5% utilization; do Cin broadcast-FMAs on the VPU.
        w = pww_ref[...]                                   # (Cin, Cout_p), resident
        out = jnp.zeros((th * wo, cout_p), jnp.float32)
        for ci in range(cin):
            out = out + y2d[:, ci:ci + 1] * w[ci:ci + 1, :]
    out = jnp.maximum(out + pwb_ref[...], 0.0)             # bias + ReLU
    o_ref[...] = out.reshape(1, th, wo, cout_p)            # lane-dense (Cout_p % 128 == 0)


# ----------------------------- wrappers ------------------------------------------------


def _pick_block_h(ho, wo, block_h):
    if block_h is not None:
        assert ho % block_h == 0, (ho, block_h)
        return block_h
    target = max(1, 256 // max(wo, 1))   # ~256 flattened rows per tile
    return max(d for d in range(1, ho + 1) if ho % d == 0 and d <= target)


def dp_conv_forward_nhwc(x_nhwc, params, *, ksize, stride, padding, eps=1e-5,
                         block_h=None, matmul_dtype=jnp.bfloat16):
    """NHWC entry point (no layout copies).  x_nhwc: (N, H, W, Cin)."""
    n, h, w, cin = x_nhwc.shape
    cout = params["pw_w"].shape[1]
    ho = (h + 2 * padding - ksize) // stride + 1
    wo = (w + 2 * padding - ksize) // stride + 1
    hp, wp = h + 2 * padding, w + 2 * padding
    th = _pick_block_h(ho, wo, block_h)
    n_h = ho // th

    # TODO(synk): zero-padding done here as one fused XLA pad; doing it fully in-kernel
    # would require masking boundary taps so padded zeros cannot leak into BN statistics.
    xp = jnp.pad(x_nhwc.astype(jnp.float32),
                 ((0, 0), (padding, padding), (padding, padding), (0, 0)))

    # Pad Cout to a lane-dense multiple of 128 so output stores are unmasked vst.
    cout_p = ((cout + 127) // 128) * 128
    pw_w_p = jnp.pad(params["pw_w"].astype(jnp.float32), ((0, 0), (0, cout_p - cout)))
    pw_b_p = jnp.pad(params["pw_b"].astype(jnp.float32), ((0, 0), (0, cout_p - cout)))

    # Full padded image per batch element, resident across the h-tile axis.
    x_spec = pl.BlockSpec((1, hp, wp, cin), lambda i, j: (i, 0, 0, 0))
    const2 = lambda i, j: (0, 0)                            # resident small operands
    cparams = pltpu.CompilerParams(
        dimension_semantics=("parallel", "parallel"),       # v7x: shard tiles over 2 TCs
        vmem_limit_bytes=32 * 1024 * 1024)

    # ---- pass 1: per-tile partial BN statistics -------------------------------------
    stats = pl.pallas_call(
        functools.partial(dp_stats_kernel, ksize=ksize, stride=stride, th=th, wo=wo),
        out_shape=jax.ShapeDtypeStruct((n, n_h, 2, cin), jnp.float32),
        grid=(n, n_h),
        in_specs=[x_spec,
                  pl.BlockSpec((ksize * ksize, cin), const2),
                  pl.BlockSpec((1, cin), const2)],
        out_specs=pl.BlockSpec((1, 1, 2, cin), lambda i, j: (i, j, 0, 0)),
        compiler_params=cparams,
    )(xp, params["dw_w"], params["dw_b"])

    # Fold global (training-mode, biased) batch stats into one per-channel affine.
    total = jnp.sum(stats, axis=(0, 1))                     # (2, Cin), tiny reduce
    count = float(n * ho * wo)
    mean = total[0] / count
    var = total[1] / count - mean * mean
    s = params["gamma"].reshape(-1) * lax.rsqrt(var + eps)
    b = params["beta"].reshape(-1) - mean * s
    s = s.reshape(1, cin).astype(jnp.float32)
    b = b.reshape(1, cin).astype(jnp.float32)

    use_mxu = cin >= 16

    # ---- pass 2: depthwise + affine + ReLU + pointwise + ReLU -----------------------
    out_p = pl.pallas_call(
        functools.partial(dp_main_kernel, ksize=ksize, stride=stride, th=th, wo=wo,
                          matmul_dtype=matmul_dtype, use_mxu=use_mxu),
        out_shape=jax.ShapeDtypeStruct((n, ho, wo, cout_p), jnp.float32),
        grid=(n, n_h),
        in_specs=[x_spec,
                  pl.BlockSpec((ksize * ksize, cin), const2),
                  pl.BlockSpec((1, cin), const2),
                  pl.BlockSpec((1, cin), const2),
                  pl.BlockSpec((1, cin), const2),
                  pl.BlockSpec((cin, cout_p), const2),
                  pl.BlockSpec((1, cout_p), const2)],
        out_specs=pl.BlockSpec((1, th, wo, cout_p), lambda i, j: (i, j, 0, 0)),
        compiler_params=cparams,
    )(xp, params["dw_w"], params["dw_b"], s, b, pw_w_p, pw_b_p)

    return out_p[..., :cout]                                # drop lane padding


def dp_conv_forward(x_nchw, params, *, ksize, stride, padding, eps=1e-5,
                    block_h=None, matmul_dtype=jnp.bfloat16):
    """PyTorch-layout wrapper: NCHW in / NCHW out (single layout copy each way)."""
    out_nhwc = dp_conv_forward_nhwc(
        jnp.transpose(x_nchw, (0, 2, 3, 1)), params, ksize=ksize, stride=stride,
        padding=padding, eps=eps, block_h=block_h, matmul_dtype=matmul_dtype)
    return jnp.transpose(out_nhwc, (0, 3, 1, 2))


# ----------------------------- params & reference --------------------------------------


def init_params(key, indim, outdim, ksize):
    """Deterministic PyTorch-like (kaiming-uniform-ish) init. BN gamma=1, beta=0."""
    k1, k2, k3, k4 = jax.random.split(key, 4)
    bound_dw = 1.0 / float(ksize)                   # fan_in = 1 * K * K
    dw_w = jax.random.uniform(k1, (ksize * ksize, indim), jnp.float32,
                              -bound_dw, bound_dw)
    dw_b = jax.random.uniform(k2, (1, indim), jnp.float32, -bound_dw, bound_dw)
    bound_pw = 1.0 / (indim ** 0.5)                 # fan_in = indim * 1 * 1
    pw_w = jax.random.uniform(k3, (indim, outdim), jnp.float32, -bound_pw, bound_pw)
    pw_b = jax.random.uniform(k4, (1, outdim), jnp.float32, -bound_pw, bound_pw)
    gamma = jnp.ones((1, indim), jnp.float32)
    beta = jnp.zeros((1, indim), jnp.float32)
    # TODO(synk): BN_2 is declared in the PyTorch __init__ but never used in forward(); omitted.
    return dict(dw_w=dw_w, dw_b=dw_b, gamma=gamma, beta=beta, pw_w=pw_w, pw_b=pw_b)


def dp_conv_reference(x_nchw, params, *, ksize, stride, padding, eps=1e-5):
    """Pure-JAX reference (mirrors the PyTorch forward in training mode)."""
    x = jnp.transpose(x_nchw, (0, 2, 3, 1)).astype(jnp.float32)
    c = x.shape[-1]
    dw = params["dw_w"].reshape(ksize, ksize, 1, c)
    y = lax.conv_general_dilated(
        x, dw, (stride, stride), [(padding, padding)] * 2,
        dimension_numbers=("NHWC", "HWIO", "NHWC"), feature_group_count=c)
    y = y + params["dw_b"].reshape(1, 1, 1, c)
    mean = jnp.mean(y, axis=(0, 1, 2), keepdims=True)
    var = jnp.mean((y - mean) ** 2, axis=(0, 1, 2), keepdims=True)
    y = (y - mean) * lax.rsqrt(var + eps) * params["gamma"].reshape(1, 1, 1, c) \
        + params["beta"].reshape(1, 1, 1, c)
    y = jnp.maximum(y, 0.0)
    y = jnp.einsum("nhwc,co->nhwo", y, params["pw_w"]) + params["pw_b"].reshape(1, 1, 1, -1)
    y = jnp.maximum(y, 0.0)
    return jnp.transpose(y, (0, 3, 1, 2))


# ----------------------------- self-test ------------------------------------------------


if __name__ == "__main__":
    root = jax.random.PRNGKey(0)
    kx1, kp1, kx2, kp2 = jax.random.split(root, 4)

    # Test 1: toy channel counts (VPU pointwise path), multi-tile grid to exercise
    #         the cross-tile two-pass BN statistics.
    indim, outdim, ksize, stride, padding = 4, 8, 3, 1, 1
    N, H, W = 2, 16, 16
    x1 = jax.random.normal(kx1, (N, indim, H, W), jnp.float32)     # NCHW like PyTorch
    p1 = init_params(kp1, indim, outdim, ksize)
    out1 = jax.block_until_ready(
        dp_conv_forward(x1, p1, ksize=ksize, stride=stride, padding=padding, block_h=8))
    ref1 = jax.block_until_ready(
        dp_conv_reference(x1, p1, ksize=ksize, stride=stride, padding=padding))
    assert out1.shape == (N, outdim, H, W), out1.shape
    assert jnp.allclose(out1, ref1, rtol=1e-3, atol=1e-3), \
        f"max abs err {jnp.max(jnp.abs(out1 - ref1))}"

    # Test 2: realistic channel counts -> MXU pointwise path with bf16 operands
    #         (f32 accumulate); looser tolerance due to bf16 MXU inputs.
    indim2, outdim2 = 128, 128
    N2, H2, W2 = 2, 8, 8
    x2 = jax.random.normal(kx2, (N2, indim2, H2, W2), jnp.float32)
    p2 = init_params(kp2, indim2, outdim2, ksize)
    out2 = jax.block_until_ready(
        dp_conv_forward(x2, p2, ksize=ksize, stride=stride, padding=padding))
    ref2 = jax.block_until_ready(
        dp_conv_reference(x2, p2, ksize=ksize, stride=stride, padding=padding))
    assert out2.shape == (N2, outdim2, H2, W2), out2.shape
    assert jnp.allclose(out2, ref2, rtol=2e-2, atol=2e-2), \
        f"max abs err {jnp.max(jnp.abs(out2 - ref2))}"

    print("KERNEL_OK")
</pallas_src>

<mosaic_0001>
module attributes {stable_mosaic.version = 11 : i64} {
  func.func @dp_stats_kernel(%arg0: i32, %arg1: i32, %arg2: memref<1x18x18x4xf32, #tpu.memory_space<vmem>>, %arg3: memref<9x4xf32, #tpu.memory_space<vmem>>, %arg4: memref<1x4xf32, #tpu.memory_space<vmem>>, %arg5: memref<1x1x2x4xf32, #tpu.memory_space<vmem>>) attributes {dimension_semantics = [#tpu.dimension_semantics<parallel>, #tpu.dimension_semantics<parallel>], iteration_bounds = array<i64: 2, 2>, scalar_prefetch = 0 : i64, scratch_operands = 0 : i64, tpu.core_type = #tpu.core_type<tc>, window_params = [{transform_indices = @transform_0, window_bounds = array<i64: 1, 18, 18, 4>}, {pipeline_mode = #tpu.pipeline_mode<synchronous>, transform_indices = @transform_1, window_bounds = array<i64: 9, 4>}, {pipeline_mode = #tpu.pipeline_mode<synchronous>, transform_indices = @transform_2, window_bounds = array<i64: 1, 4>}, {transform_indices = @transform_3, window_bounds = array<i64: 1, 1, 2, 4>}]} {
    %c8_i32 = arith.constant 8 : i32
    %0 = arith.muli %arg1, %c8_i32 : i32
    %c0 = arith.constant 0 : index
    %c0_0 = arith.constant 0 : index
    %1 = vector.load %arg3[%c0, %c0_0] : memref<9x4xf32, #tpu.memory_space<vmem>>, vector<9x4xf32>
    %cst = arith.constant 0.000000e+00 : f32
    %2 = vector.broadcast %cst : f32 to vector<8x16x4xf32>
    %c0_i32 = arith.constant 0 : i32
    %3 = arith.addi %0, %c0_i32 : i32
    %c0_1 = arith.constant 0 : index
    %4 = arith.index_cast %3 : i32 to index
    %c0_2 = arith.constant 0 : index
    %c0_3 = arith.constant 0 : index
    %5 = vector.load %arg2[%c0_1, %4, %c0_2, %c0_3] : memref<1x18x18x4xf32, #tpu.memory_space<vmem>>, vector<1x8x16x4xf32>
    %6 = vector.shape_cast %5 : vector<1x8x16x4xf32> to vector<8x16x4xf32>
    %7 = vector.extract_strided_slice %1 {offsets = [0, 0], sizes = [1, 4], strides = [1, 1]} : vector<9x4xf32> to vector<1x4xf32>
    %8 = vector.shape_cast %7 : vector<1x4xf32> to vector<4xf32>
    %9 = vector.shape_cast %8 : vector<4xf32> to vector<1x1x4xf32>
    %10 = vector.broadcast %9 : vector<1x1x4xf32> to vector<8x16x4xf32>
    %11 = arith.mulf %6, %10 : vector<8x16x4xf32>
    %12 = arith.addf %2, %11 : vector<8x16x4xf32>
    %c0_i32_4 = arith.constant 0 : i32
    %13 = arith.addi %0, %c0_i32_4 : i32
    %c0_5 = arith.constant 0 : index
    %14 = arith.index_cast %13 : i32 to index
    %c1 = arith.constant 1 : index
    %c0_6 = arith.constant 0 : index
    %15 = vector.load %arg2[%c0_5, %14, %c1, %c0_6] : memref<1x18x18x4xf32, #tpu.memory_space<vmem>>, vector<1x8x16x4xf32>
    %16 = vector.shape_cast %15 : vector<1x8x16x4xf32> to vector<8x16x4xf32>
    %17 = vector.extract_strided_slice %1 {offsets = [1, 0], sizes = [1, 4], strides = [1, 1]} : vector<9x4xf32> to vector<1x4xf32>
    %18 = vector.shape_cast %17 : vector<1x4xf32> to vector<4xf32>
    %19 = vector.shape_cast %18 : vector<4xf32> to vector<1x1x4xf32>
    %20 = vector.broadcast %19 : vector<1x1x4xf32> to vector<8x16x4xf32>
    %21 = arith.mulf %16, %20 : vector<8x16x4xf32>
    %22 = arith.addf %12, %21 : vector<8x16x4xf32>
    %c0_i32_7 = arith.constant 0 : i32
    %23 = arith.addi %0, %c0_i32_7 : i32
    %c0_8 = arith.constant 0 : index
    %24 = arith.index_cast %23 : i32 to index
    %c2 = arith.constant 2 : index
    %c0_9 = arith.constant 0 : index
    %25 = vector.load %arg2[%c0_8, %24, %c2, %c0_9] : memref<1x18x18x4xf32, #tpu.memory_space<vmem>>, vector<1x8x16x4xf32>
    %26 = vector.shape_cast %25 : vector<1x8x16x4xf32> to vector<8x16x4xf32>
    %27 = vector.extract_strided_slice %1 {offsets = [2, 0], sizes = [1, 4], strides = [1, 1]} : vector<9x4xf32> to vector<1x4xf32>
    %28 = vector.shape_cast %27 : vector<1x4xf32> to vector<4xf32>
    %29 = vector.shape_cast %28 : vector<4xf32> to vector<1x1x4xf32>
    %30 = vector.broadcast %29 : vector<1x1x4xf32> to vector<8x16x4xf32>
    %31 = arith.mulf %26, %30 : vector<8x16x4xf32>
    %32 = arith.addf %22, %31 : vector<8x16x4xf32>
    %c1_i32 = arith.constant 1 : i32
    %33 = arith.addi %0, %c1_i32 : i32
    %c0_10 = arith.constant 0 : index
    %34 = arith.index_cast %33 : i32 to index
    %c0_11 = arith.constant 0 : index
    %c0_12 = arith.constant 0 : index
    %35 = vector.load %arg2[%c0_10, %34, %c0_11, %c0_12] : memref<1x18x18x4xf32, #tpu.memory_space<vmem>>, vector<1x8x16x4xf32>
    %36 = vector.shape_cast %35 : vector<1x8x16x4xf32> to vector<8x16x4xf32>
    %37 = vector.extract_strided_slice %1 {offsets = [3, 0], sizes = [1, 4], strides = [1, 1]} : vector<9x4xf32> to vector<1x4xf32>
    %38 = vector.shape_cast %37 : vector<1x4xf32> to vector<4xf32>
    %39 = vector.shape_cast %38 : vector<4xf32> to vector<1x1x4xf32>
    %40 = vector.broadcast %39 : vector<1x1x4xf32> to vector<8x16x4xf32>
    %41 = arith.mulf %36, %40 : vector<8x16x4xf32>
    %42 = arith.addf %32, %41 : vector<8x16x4xf32>
    %c1_i32_13 = arith.constant 1 : i32
    %43 = arith.addi %0, %c1_i32_13 : i32
    %c0_14 = arith.constant 0 : index
    %44 = arith.index_cast %43 : i32 to index
    %c1_15 = arith.constant 1 : index
    %c0_16 = arith.constant 0 : index
    %45 = vector.load %arg2[%c0_14, %44, %c1_15, %c0_16] : memref<1x18x18x4xf32, #tpu.memory_space<vmem>>, vector<1x8x16x4xf32>
    %46 = vector.shape_cast %45 : vector<1x8x16x4xf32> to vector<8x16x4xf32>
    %47 = vector.extract_strided_slice %1 {offsets = [4, 0], sizes = [1, 4], strides = [1, 1]} : vector<9x4xf32> to vector<1x4xf32>
    %48 = vector.shape_cast %47 : vector<1x4xf32> to vector<4xf32>
    %49 = vector.shape_cast %48 : vector<4xf32> to vector<1x1x4xf32>
    %50 = vector.broadcast %49 : vector<1x1x4xf32> to vector<8x16x4xf32>
    %51 = arith.mulf %46, %50 : vector<8x16x4xf32>
    %52 = arith.addf %42, %51 : vector<8x16x4xf32>
    %c1_i32_17 = arith.constant 1 : i32
    %53 = arith.addi %0, %c1_i32_17 : i32
    %c0_18 = arith.constant 0 : index
    %54 = arith.index_cast %53 : i32 to index
    %c2_19 = arith.constant 2 : index
    %c0_20 = arith.constant 0 : index
    %55 = vector.load %arg2[%c0_18, %54, %c2_19, %c0_20] : memref<1x18x18x4xf32, #tpu.memory_space<vmem>>, vector<1x8x16x4xf32>
    %56 = vector.shape_cast %55 : vector<1x8x16x4xf32> to vector<8x16x4xf32>
    %57 = vector.extract_strided_slice %1 {offsets = [5, 0], sizes = [1, 4], strides = [1, 1]} : vector<9x4xf32> to vector<1x4xf32>
    %58 = vector.shape_cast %57 : vector<1x4xf32> to vector<4xf32>
    %59 = vector.shape_cast %58 : vector<4xf32> to vector<1x1x4xf32>
    %60 = vector.broadcast %59 : vector<1x1x4xf32> to vector<8x16x4xf32>
    %61 = arith.mulf %56, %60 : vector<8x16x4xf32>
    %62 = arith.addf %52, %61 : vector<8x16x4xf32>
    %c2_i32 = arith.constant 2 : i32
    %63 = arith.addi %0, %c2_i32 : i32
    %c0_21 = arith.constant 0 : index
    %64 = arith.index_cast %63 : i32 to index
    %c0_22 = arith.constant 0 : index
    %c0_23 = arith.constant 0 : index
    %65 = vector.load %arg2[%c0_21, %64, %c0_22, %c0_23] : memref<1x18x18x4xf32, #tpu.memory_space<vmem>>, vector<1x8x16x4xf32>
    %66 = vector.shape_cast %65 : vector<1x8x16x4xf32> to vector<8x16x4xf32>
    %67 = vector.extract_strided_slice %1 {offsets = [6, 0], sizes = [1, 4], strides = [1, 1]} : vector<9x4xf32> to vector<1x4xf32>
    %68 = vector.shape_cast %67 : vector<1x4xf32> to vector<4xf32>
    %69 = vector.shape_cast %68 : vector<4xf32> to vector<1x1x4xf32>
    %70 = vector.broadcast %69 : vector<1x1x4xf32> to vector<8x16x4xf32>
    %71 = arith.mulf %66, %70 : vector<8x16x4xf32>
    %72 = arith.addf %62, %71 : vector<8x16x4xf32>
    %c2_i32_24 = arith.constant 2 : i32
    %73 = arith.addi %0, %c2_i32_24 : i32
    %c0_25 = arith.constant 0 : index
    %74 = arith.index_cast %73 : i32 to index
    %c1_26 = arith.constant 1 : index
    %c0_27 = arith.constant 0 : index
    %75 = vector.load %arg2[%c0_25, %74, %c1_26, %c0_27] : memref<1x18x18x4xf32, #tpu.memory_space<vmem>>, vector<1x8x16x4xf32>
    %76 = vector.shape_cast %75 : vector<1x8x16x4xf32> to vector<8x16x4xf32>
    %77 = vector.extract_strided_slice %1 {offsets = [7, 0], sizes = [1, 4], strides = [1, 1]} : vector<9x4xf32> to vector<1x4xf32>
    %78 = vector.shape_cast %77 : vector<1x4xf32> to vector<4xf32>
    %79 = vector.shape_cast %78 : vector<4xf32> to vector<1x1x4xf32>
    %80 = vector.broadcast %79 : vector<1x1x4xf32> to vector<8x16x4xf32>
    %81 = arith.mulf %76, %80 : vector<8x16x4xf32>
    %82 = arith.addf %72, %81 : vector<8x16x4xf32>
    %c2_i32_28 = arith.constant 2 : i32
    %83 = arith.addi %0, %c2_i32_28 : i32
    %c0_29 = arith.constant 0 : index
    %84 = arith.index_cast %83 : i32 to index
    %c2_30 = arith.constant 2 : index
    %c0_31 = arith.constant 0 : index
    %85 = vector.load %arg2[%c0_29, %84, %c2_30, %c0_31] : memref<1x18x18x4xf32, #tpu.memory_space<vmem>>, vector<1x8x16x4xf32>
    %86 = vector.shape_cast %85 : vector<1x8x16x4xf32> to vector<8x16x4xf32>
    %87 = vector.extract_strided_slice %1 {offsets = [8, 0], sizes = [1, 4], strides = [1, 1]} : vector<9x4xf32> to vector<1x4xf32>
    %88 = vector.shape_cast %87 : vector<1x4xf32> to vector<4xf32>
    %89 = vector.shape_cast %88 : vector<4xf32> to vector<1x1x4xf32>
    %90 = vector.broadcast %89 : vector<1x1x4xf32> to vector<8x16x4xf32>
    %91 = arith.mulf %86, %90 : vector<8x16x4xf32>
    %92 = arith.addf %82, %91 : vector<8x16x4xf32>
    %c0_32 = arith.constant 0 : index
    %c0_33 = arith.constant 0 : index
    %93 = vector.load %arg4[%c0_32, %c0_33] : memref<1x4xf32, #tpu.memory_space<vmem>>, vector<1x4xf32>
    %94 = vector.shape_cast %93 : vector<1x4xf32> to vector<1x1x4xf32>
    %95 = vector.broadcast %94 : vector<1x1x4xf32> to vector<8x16x4xf32>
    %96 = arith.addf %92, %95 : vector<8x16x4xf32>
    %97 = vector.shape_cast %96 : vector<8x16x4xf32> to vector<128x4xf32>
    %cst_34 = arith.constant dense<0.000000e+00> : vector<4xf32>
    %98 = vector.multi_reduction <add>, %97, %cst_34 [0] : vector<128x4xf32> to vector<4xf32>
    %99 = vector.shape_cast %98 : vector<4xf32> to vector<1x4xf32>
    %c0_35 = arith.constant 0 : index
    %c0_36 = arith.constant 0 : index
    %c0_37 = arith.constant 0 : index
    %c0_38 = arith.constant 0 : index
    %100 = vector.load %arg5[%c0_35, %c0_36, %c0_37, %c0_38] : memref<1x1x2x4xf32, #tpu.memory_space<vmem>>, vector<1x1x1x4xf32>
    %101 = vector.shape_cast %100 : vector<1x1x1x4xf32> to vector<1x4xf32>
    %102 = vector.shape_cast %99 : vector<1x4xf32> to vector<1x1x1x4xf32>
    tpu.vector_store %arg5[%c0_35, %c0_36, %c0_37, %c0_38], %102 {strides = array<i32>} : memref<1x1x2x4xf32, #tpu.memory_space<vmem>>, vector<1x1x1x4xf32>,
    %103 = arith.mulf %97, %97 : vector<128x4xf32>
    %cst_39 = arith.constant dense<0.000000e+00> : vector<4xf32>
    %104 = vector.multi_reduction <add>, %103, %cst_39 [0] : vector<128x4xf32> to vector<4xf32>
    %105 = vector.shape_cast %104 : vector<4xf32> to vector<1x4xf32>
    %c0_40 = arith.constant 0 : index
    %c0_41 = arith.constant 0 : index
    %c1_42 = arith.constant 1 : index
    %c0_43 = arith.constant 0 : index
    %106 = vector.load %arg5[%c0_40, %c0_41, %c1_42, %c0_43] : memref<1x1x2x4xf32, #tpu.memory_space<vmem>>, vector<1x1x1x4xf32>
    %107 = vector.shape_cast %106 : vector<1x1x1x4xf32> to vector<1x4xf32>
    %108 = vector.shape_cast %105 : vector<1x4xf32> to vector<1x1x1x4xf32>
    tpu.vector_store %arg5[%c0_40, %c0_41, %c1_42, %c0_43], %108 {strides = array<i32>} : memref<1x1x2x4xf32, #tpu.memory_space<vmem>>, vector<1x1x1x4xf32>,
    return
  }
  func.func @transform_0(%arg0: i32, %arg1: i32) -> (i32, i32, i32, i32) {
    %c0_i32 = arith.constant 0 : i32
    %c0_i32_0 = arith.constant 0 : i32
    %c0_i32_1 = arith.constant 0 : i32
    %c0_i32_2 = arith.constant 0 : i32
    return %arg0, %c0_i32, %c0_i32_0, %c0_i32_1 : i32, i32, i32, i32
  }
  func.func @transform_1(%arg0: i32, %arg1: i32) -> (i32, i32) {
    %c0_i32 = arith.constant 0 : i32
    %c0_i32_0 = arith.constant 0 : i32
    %c0_i32_1 = arith.constant 0 : i32
    return %c0_i32, %c0_i32_0 : i32, i32
  }
  func.func @transform_2(%arg0: i32, %arg1: i32) -> (i32, i32) {
    %c0_i32 = arith.constant 0 : i32
    %c0_i32_0 = arith.constant 0 : i32
    %c0_i32_1 = arith.constant 0 : i32
    return %c0_i32, %c0_i32_0 : i32, i32
  }
  func.func @transform_3(%arg0: i32, %arg1: i32) -> (i32, i32, i32, i32) {
    %c0_i32 = arith.constant 0 : i32
    %c0_i32_0 = arith.constant 0 : i32
    %c0_i32_1 = arith.constant 0 : i32
    return %arg0, %arg1, %c0_i32, %c0_i32_0 : i32, i32, i32, i32
  }
}

</mosaic_0001>

<bundles_post_ra>
// kernel: tpu_custom_call.1
= control target key start
LH: loop header
LB: loop body
LE: loop exit
PB: predicated region body
PF: predicated region fallthrough
CT: control target
= control target key end

     0   :  { %8 = vsyncpa [#allocation3], 0  ;;  %s1829_s0 = inlined_call_operand.vmem [shape: f32[2,18,18,4], index: 0, kind: input, shape index: {}]   ;;  %s1830_s1 = inlined_call_operand.vmem [shape: f32[9,4], index: 1, kind: input, shape index: {}]   ;;  %s1831_s2 = inlined_call_operand.vmem [shape: f32[1,4], index: 2, kind: input, shape index: {}]   ;;  %s1832_s3 = inlined_call_operand.hbm [shape: f32[2,2,2,4], index: 3, kind: output, shape index: {}]  }
   0x1   :  { %10 = vsyncpa [#allocation3 + $0x1], 0  ;;  %s1182_s12 = smov 0   ;;  %s1184_s13 = smov 0  }
   0x2   :  { %s1186_s14 = smov 0   ;;  %s1188_s15 = smov 0  }
   0x3   :  { %s1190_s16 = smov 0   ;;  %s1192_s17 = smov 0  }
   0x4   :  { %s1194_s18 = smov 0   ;;  %s1196_s19 = smov 0  }
   0x5 LB: > { %s877_s20 = sadd.s32 4294967295, %s1159_s19   ;;  %s878_s21 = sadd.s32 4294967294, %s1159_s19   ;;  %s1159_s19 = sphi %s1196_s19, %s16_s19   ;;  %s1155_s18 = sphi %s1194_s18, %s2007_s18   ;;  %s1151_s17 = sphi %s1192_s17, %s2006_s17   ;;  %s1147_s16 = sphi %s1190_s16, %s2005_s16   ;;  %s1143_s15 = sphi %s1188_s15, %s2004_s15   ;;  %s1139_s14 = sphi %s1186_s14, %s2003_s14   ;;  %s1135_s13 = sphi %s1184_s13, %s2002_s13   ;;  %s1131_s12 = sphi %s1182_s12, %s2001_s12  }
   0x6   : > { %s25_s22 = sadd.s32 1, %s1151_s17  ;;  %s28_s23 = sadd.s32 1, %s1155_s18 }
   0x7   : > { %p26_p0 = scmp.ge.s32.totalorder %s25_s22, 2  ;;  %p115_p1 = scmp.ne.s32.totalorder %s1139_s14, %s1135_s13 }
   0x8   : > { %p116_p2 = scmp.eq.s32.totalorder %s877_s20, 3  ;;  %p121_p5 = scmp.ne.s32.totalorder %s1135_s13, %s1131_s12 }
   0x9   : > { %s2009_s22 = smov (%p26_p0, %s25_s22), 0  ;;  %s2011_s23 = smov (!%p26_p0, %s28_s23), %s1155_s18 }
   0xa   : > { %s101_s24 = ssub.s32 %s1151_s17, %s2009_s22  ;;  %p1233_p3 = por %p116_p2, %p115_p1 }
   0xb   : > { %p30_p4 = scmp.ge.s32.totalorder %s2011_s23, 2  ;;  %p122_p6 = scmp.eq.s32.totalorder %s878_s21, 3 }
   0xc   : > { %p881_p7 = scmp.ge.s32.totalorder %s1159_s19, 1  ;;  %p154_p9 = scmp.lt.s32.totalorder %s1159_s19, 5 }
   0xd   : > { %s2013_s23 = smov (%p30_p4, %s2011_s23), 0  ;;  %p1242_p8 = por %p122_p6, %p121_p5 }
   0xe   : > { %s100_s27 = ssub.s32 %s1155_s18, %s2013_s23  ;;  %s105_s28 = sadd.s32 1, %s1139_s14 }
   0xf   : > { %s102_s29 = sor.u32 %s101_s24, %s100_s27  ;;  %p155_p10 = pnand %p881_p7, %p154_p9 }
  0x10   : > { %p103_p11 = scmp.eq.s32.totalorder %s102_s29, 0 }
  0x11   : > { %158 = sbr.rel (%p155_p10) target bundleno = 167 (0xa7), region = 32 }
  0x12   : > { %s1251_s30 = scalar_select %p103_p11, %s1139_s14, %s105_s28  }
  0x18   : > { %p178_p12 = scmp.lt.s32.totalorder %s1147_s16, 1  ;;  %v204_v0 = vlaneseq  ;;  %s885_s6 = smul.u32 192, %s1143_s15  ;;  %v184_v3 = vld [vmem:[%s1830_s1] sm:$0xff]  ;;  %vm685_vm0 = vcmask 31744   ;;  %vm723_vm1 = vcmask 24576  }
  0x19   : > { %s175_s29 = sand.u32 1, %s1135_s13  }
  0x1a   : > { %s179_s4 = scalar_select %p178_p12, %s1147_s16, 1  ;;  %v205_v1 = vshrl.u32 %v204_v0, 7 }
  0x1c   : > { %s993_s5 = smul.u32 432, %s179_s4  ;;  %v206_v2 = vsub.s32 0, %v205_v1  ;;  %v365_v4 = vsub.s32 3, %v205_v1  ;;  %v258_v5 = vsub.s32 1, %v205_v1  ;;  %v310_v6 = vsub.s32 2, %v205_v1  ;;  %s882_s4 = sshll.u32 %s175_s29, 1 }
  0x1d   : > { %v417_v7 = vsub.s32 4, %v205_v1  ;;  %v469_v8 = vsub.s32 5, %v205_v1  ;;  %v524_v9 = vsub.s32 6, %v205_v1  ;;  %v576_v13 = vsub.s32 7, %v205_v1 }
  0x1e   : > { %s182_s9 = scalar_lea.vmem %s1829_s0, %s993_s5  ;;  %v207_v12 = vrot.slane %v184_v3, %v206_v2  ;;  %v1271_v17 = vrot.slane %v184_v3, %v365_v4  ;;  %v1282_v21 = vrot.slane %v184_v3, %v258_v5  ;;  %v1293_v25 = vrot.slane %v184_v3, %v310_v6  ;;  %s989_s5 = sshll.u32 %s1147_s16, 1 }
  0x1f   : > { %s1262_s20 = scalar_lea.vmem %s182_s9, %s885_s6  ;;  %v1295_v26 = vrot.slane %v184_v3, %v417_v7  ;;  %v1297_v27 = vrot.slane %v184_v3, %v469_v8  ;;  %v1299_v28 = vrot.slane %v184_v3, %v524_v9  ;;  %v1310_v35 = vrot.slane %v184_v3, %v576_v13  ;;  %s177_s6 = scalar_lea.vmem [#allocation2], %s882_s4 }
  0x20   : > { %v188_v10 = vld [vmem:[%s1262_s20] sm:$0xff]  ;;  %v189_v11 = vld [vmem:[%s1262_s20 + $0x8] sm:$0xff]  ;;  %v190_v14 = vld [vmem:[%s1262_s20 + $0x18] sm:$0xff]  ;;  %s791_s7 = sadd.s32 %s1143_s15, %s989_s5  ;;  %s795_s9 = sshll.u32 %s177_s6, 4  ;;  %s1777_s9 = int_to_ptr.vmem [resolvable:$true] %s795_s9 }
  0x21   : > { %v191_v15 = vld [vmem:[%s1262_s20 + $0x20] sm:$0xff]  ;;  %v1269_v16 = vld [vmem:[%s1262_s20 + $0x30] sm:$0xff]  ;;  %v1274_v18 = vld [vmem:[%s1262_s20 + $0x38] sm:$0xff]  ;;  %1903 = vst [vmem:[#allocation10_spill] sm:$0xff] %v1295_v26  ;;  %v208_v32 = vmul.f32 %v207_v12, %v188_v10  ;;  %v209_v33 = vmul.f32 %v207_v12, %v189_v11  ;;  %v210_v34 = vmul.f32 %v207_v12, %v190_v14  ;;  %v1322_v42 = vmul.f32 %v1271_v17, %v190_v14  ;;  %s990_s8 = sshll.u32 %s791_s7, 5  ;;  %s780_s16 = scalar_lea.sflag [#allocation3], %s175_s29 }
  0x22   : > { %1898 = vst [vmem:[#allocation5_spill] sm:$0xff] %v1269_v16  ;;  %1899 = vst [vmem:[#allocation6_spill] sm:$0xff] %v1274_v18  ;;  %v1277_v19 = vld [vmem:[%s1262_s20 + $0x48] sm:$0xff]  ;;  %v1280_v20 = vld [vmem:[%s1262_s20 + $0x50] sm:$0xff]  ;;  %v211_v38 = vmul.f32 %v207_v12, %v191_v15  ;;  %v212_v39 = vmul.f32 %v207_v12, %v1269_v16  ;;  %v213_v40 = vmul.f32 %v207_v12, %v1274_v18  ;;  %s1065_s21 = scalar_lea.vmem %s1777_s9, 32  ;;  %s1161_s15 = smov [#allocation2]  }
  0x23   : > { %1900 = vst [vmem:[#allocation7_spill] sm:$0xff] %v1277_v19  ;;  %1901 = vst [vmem:[#allocation8_spill] sm:$0xff] %v1280_v20  ;;  %v1285_v22 = vld [vmem:[%s1262_s20 + $0x60] sm:$0xff]  ;;  %v1288_v23 = vld [vmem:[%s1262_s20 + $0x68] sm:$0xff]  ;;  %v214_v43 = vmul.f32 %v207_v12, %v1277_v19  ;;  %v215_v44 = vmul.f32 %v207_v12, %v1280_v20  ;;  %v1335_v49 = vmul.f32 %v1271_v17, %v191_v15  ;;  %p1066_p13 = scmp.ne.s32.totalorder %s1777_s9, %s1065_s21  ;;  %s1069_s24 = sshll.u32 %s1161_s15, 4  ;;  %s1070_s24 = int_to_ptr.vmem [resolvable:$false] %s1069_s24 }
  0x24   : > { %1902 = vst [vmem:[#allocation9_spill] sm:$0xff] %v1285_v22  ;;  %v1291_v24 = vld [vmem:[%s1262_s20 + $0x78] sm:$0xff]  ;;  %1904 = vst [vmem:[#allocation11_spill] sm:$0xff] %v1297_v27  ;;  %v1302_v29 = vld [vmem:[%s1262_s20 + $0x80] sm:$0xff]  ;;  %v216_v45 = vmul.f32 %v207_v12, %v1285_v22  ;;  %v217_v50 = vmul.f32 %v207_v12, %v1288_v23  ;;  %v1351_v56 = vmul.f32 %v1271_v17, %v1269_v16  ;;  %s1071_s27 = scalar_lea.vmem %s1070_s24, 64  ;;  %p1072_p2 = scmp.lt.s32.totalorder %s1777_s9, %s1070_s24 }
  0x25   : > { %1905 = vst [vmem:[#allocation12_spill] sm:$0xff] %v1299_v28  ;;  %v1305_v30 = vld [vmem:[%s1262_s20 + $0x90] sm:$0xff]  ;;  %v1308_v31 = vld [vmem:[%s1262_s20 + $0x98] sm:$0xff]  ;;  %1906 = vst [vmem:[#allocation13_spill] sm:$0xff] %v1310_v35  ;;  %v218_v51 = vmul.f32 %v207_v12, %v1291_v24  ;;  %v219_v52 = vmul.f32 %v207_v12, %v1302_v29  ;;  %v1367_v63 = vmul.f32 %v1271_v17, %v1274_v18  ;;  %p1067_p0 = pnand %p1066_p13, %p1233_p3  ;;  %p1073_p4 = scmp.lt.s32.totalorder %s1071_s27, %s1065_s21 }
  0x26   : > { %v1313_v36 = vld [vmem:[%s1262_s20 + $0xa8] sm:$0xff]  ;;  %v1316_v37 = vld [vmem:[%s1262_s20 + $0xb0] sm:$0xff]  ;;  %v1329_v47 = vld [vmem:[%s1262_s20 + $0x19] sm:$0xff]  ;;  %v220_v57 = vmul.f32 %v207_v12, %v1305_v30  ;;  %v221_v58 = vmul.f32 %v207_v12, %v1308_v31  ;;  %v1383_v6 = vmul.f32 %v1271_v17, %v1277_v19  ;;  %v1402_v13 = vmul.f32 %v1271_v17, %v1280_v20 }
  0x27   : > { %v240_v41 = vld [vmem:[%s1262_s20 + $0x1] sm:$0xff]  ;;  %v241_v46 = vld [vmem:[%s1262_s20 + $0x9] sm:$0xff]  ;;  %1907 = vst [vmem:[#allocation14_spill] sm:$0xff] %v1329_v47  ;;  %v1341_v53 = vld [vmem:[%s1262_s20 + $0x31] sm:$0xff]  ;;  %v222_v59 = vmul.f32 %v207_v12, %v1313_v36  ;;  %v223_v0 = vmul.f32 %v207_v12, %v1316_v37  ;;  %v262_v10 = vmul.f32 %v1282_v21, %v1329_v47  ;;  %p1068_p1 = pneg %p1067_p0  ;;  %p1074_p5 = por %p1073_p4, %p1072_p2 }
  0x28   : > { %v1332_v48 = vld [vmem:[%s1262_s20 + $0x21] sm:$0xff]  ;;  %1909 = vst [vmem:[#allocation16_spill] sm:$0xff] %v1341_v53  ;;  %v1344_v54 = vld [vmem:[%s1262_s20 + $0x39] sm:$0xff]  ;;  %v1347_v55 = vld [vmem:[%s1262_s20 + $0x49] sm:$0xff]  ;;  %v260_v4 = vmul.f32 %v1282_v21, %v240_v41  ;;  %v261_v5 = vmul.f32 %v1282_v21, %v241_v46  ;;  %v264_v12 = vmul.f32 %v1282_v21, %v1341_v53  ;;  %v1412_v46 = vmul.f32 %v1271_v17, %v1285_v22 }
  0x29   : > { %1908 = vst [vmem:[#allocation15_spill] sm:$0xff] %v1332_v48  ;;  %1910 = vst [vmem:[#allocation17_spill] sm:$0xff] %v1344_v54  ;;  %v1357_v60 = vld [vmem:[%s1262_s20 + $0x51] sm:$0xff]  ;;  %v1360_v61 = vld [vmem:[%s1262_s20 + $0x61] sm:$0xff]  ;;  %v263_v11 = vmul.f32 %v1282_v21, %v1332_v48  ;;  %v265_v14 = vmul.f32 %v1282_v21, %v1344_v54  ;;  %v266_v15 = vmul.f32 %v1282_v21, %v1347_v55  ;;  %p1075_p6 = pnand %p1074_p5, %p1068_p1 }
  0x2a   : > { %1911 = vst [vmem:[#allocation18_spill] sm:$0xff] %v1347_v55  ;;  %1912 = vst [vmem:[#allocation19_spill] sm:$0xff] %v1357_v60  ;;  %v1363_v62 = vld [vmem:[%s1262_s20 + $0x69] sm:$0xff]  ;;  %v1371_v1 = vld [vmem:[%s1262_s20 + $0x79] sm:$0xff]  ;;  %v267_v41 = vmul.f32 %v1282_v21, %v1357_v60  ;;  %v268_v35 = vmul.f32 %v1282_v21, %v1360_v61  ;;  %v278_v60 = vadd.f32 %v262_v10, %v210_v34 }
  0x2b   : > { %1913 = vst [vmem:[#allocation20_spill] sm:$0xff] %v1360_v61  ;;  %1914 = vst [vmem:[#allocation21_spill] sm:$0xff] %v1363_v62  ;;  %v1374_v2 = vld [vmem:[%s1262_s20 + $0x81] sm:$0xff]  ;;  %v1377_v3 = vld [vmem:[%s1262_s20 + $0x91] sm:$0xff]  ;;  %v269_v20 = vmul.f32 %v1282_v21, %v1363_v62  ;;  %v270_v19 = vmul.f32 %v1282_v21, %v1371_v1  ;;  %v277_v61 = vadd.f32 %v261_v5, %v209_v33 }
  0x2c   : > { %1915 = vst [vmem:[#allocation22_spill] sm:$0xff] %v1371_v1  ;;  %1916 = vst [vmem:[#allocation23_spill] sm:$0xff] %v1374_v2  ;;  %v1386_v7 = vld [vmem:[%s1262_s20 + $0x99] sm:$0xff]  ;;  %v1389_v8 = vld [vmem:[%s1262_s20 + $0xa9] sm:$0xff]  ;;  %v271_v18 = vmul.f32 %v1282_v21, %v1374_v2  ;;  %v272_v28 = vmul.f32 %v1282_v21, %v1377_v3  ;;  %v276_v1 = vadd.f32 %v260_v4, %v208_v32 }
  0x2d   : > { %1917 = vst [vmem:[#allocation24_spill] sm:$0xff] %v1377_v3  ;;  %1918 = vst [vmem:[#allocation25_spill] sm:$0xff] %v1386_v7  ;;  %v1392_v9 = vld [vmem:[%s1262_s20 + $0xb1] sm:$0xff]  ;;  %v273_v22 = vmul.f32 %v1282_v21, %v1386_v7  ;;  %v274_v16 = vmul.f32 %v1282_v21, %v1389_v8  ;;  %v292_v62 = vld [vmem:[%s1262_s20 + $0x2] sm:$0xff]  ;;  %v279_v2 = vadd.f32 %v263_v11, %v211_v38 }
  0x2e   : > { %1919 = vst [vmem:[#allocation26_spill] sm:$0xff] %v1389_v8  ;;  %1920 = vst [vmem:[#allocation27_spill] sm:$0xff] %v1392_v9  ;;  %v275_v27 = vmul.f32 %v1282_v21, %v1392_v9  ;;  %v293_v3 = vld [vmem:[%s1262_s20 + $0xa] sm:$0xff]  ;;  %v1433_v55 = vld [vmem:[%s1262_s20 + $0x1a] sm:$0xff]  ;;  %v280_v54 = vadd.f32 %v264_v12, %v212_v39  ;;  %v281_v53 = vadd.f32 %v265_v14, %v213_v40 }
  0x2f   : > { %1921 = vst [vmem:[#allocation28_spill] sm:$0xff] %v1402_v13  ;;  %1922 = vst [vmem:[#allocation29_spill] sm:$0xff] %v1412_v46  ;;  %v1436_v7 = vld [vmem:[%s1262_s20 + $0x22] sm:$0xff]  ;;  %v282_v8 = vadd.f32 %v266_v15, %v214_v43  ;;  %v283_v48 = vadd.f32 %v267_v41, %v215_v44  ;;  %v1439_v21 = vld [vmem:[%s1262_s20 + $0x32] sm:$0xff]  ;;  %v284_v34 = vadd.f32 %v268_v35, %v216_v45 }
  0x30   : > { %1923 = vst [vmem:[#allocation30_spill] sm:$0xff] %v1433_v55  ;;  %1924 = vst [vmem:[#allocation31_spill] sm:$0xff] %v1436_v7  ;;  %v1442_v32 = vld [vmem:[%s1262_s20 + $0x3a] sm:$0xff]  ;;  %v1445_v33 = vld [vmem:[%s1262_s20 + $0x4a] sm:$0xff]  ;;  %v285_v38 = vadd.f32 %v269_v20, %v217_v50  ;;  %v286_v4 = vadd.f32 %v270_v19, %v218_v51  ;;  %v287_v5 = vadd.f32 %v271_v18, %v219_v52 }
  0x31   : > { %1925 = vst [vmem:[#allocation32_spill] sm:$0xff] %v1439_v21  ;;  %1926 = vst [vmem:[#allocation33_spill] sm:$0xff] %v1442_v32  ;;  %v1448_v39 = vld [vmem:[%s1262_s20 + $0x52] sm:$0xff]  ;;  %v1451_v40 = vld [vmem:[%s1262_s20 + $0x62] sm:$0xff]  ;;  %v288_v44 = vadd.f32 %v272_v28, %v220_v57  ;;  %v289_v10 = vadd.f32 %v273_v22, %v221_v58  ;;  %v290_v11 = vadd.f32 %v274_v16, %v222_v59 }
  0x32   : > { %1927 = vst [vmem:[#allocation34_spill] sm:$0xff] %v1445_v33  ;;  %1928 = vst [vmem:[#allocation35_spill] sm:$0xff] %v1448_v39  ;;  %v1454_v43 = vld [vmem:[%s1262_s20 + $0x6a] sm:$0xff]  ;;  %v291_v12 = vadd.f32 %v275_v27, %v223_v0  ;;  %v1457_v14 = vld [vmem:[%s1262_s20 + $0x7a] sm:$0xff]  ;;  %v312_v20 = vmul.f32 %v1293_v25, %v292_v62  ;;  %v313_v45 = vmul.f32 %v1293_v25, %v293_v3 }
  0x33   : > { %1929 = vst [vmem:[#allocation36_spill] sm:$0xff] %v1451_v40  ;;  %1930 = vst [vmem:[#allocation37_spill] sm:$0xff] %v1454_v43  ;;  %v1460_v15 = vld [vmem:[%s1262_s20 + $0x82] sm:$0xff]  ;;  %v1463_v41 = vld [vmem:[%s1262_s20 + $0x92] sm:$0xff]  ;;  %v314_v16 = vmul.f32 %v1293_v25, %v1433_v55  ;;  %v315_v22 = vmul.f32 %v1293_v25, %v1436_v7  ;;  %v316_v27 = vmul.f32 %v1293_v25, %v1439_v21 }
  0x34   : > { %1931 = vst [vmem:[#allocation38_spill] sm:$0xff] %v1457_v14  ;;  %1932 = vst [vmem:[#allocation39_spill] sm:$0xff] %v1460_v15  ;;  %v1466_v35 = vld [vmem:[%s1262_s20 + $0x9a] sm:$0xff]  ;;  %v1469_v19 = vld [vmem:[%s1262_s20 + $0xaa] sm:$0xff]  ;;  %v317_v28 = vmul.f32 %v1293_v25, %v1442_v32  ;;  %v318_v50 = vmul.f32 %v1293_v25, %v1445_v33  ;;  %v319_v51 = vmul.f32 %v1293_v25, %v1448_v39 }
  0x35   : > { %1933 = vst [vmem:[#allocation40_spill] sm:$0xff] %v1463_v41  ;;  %1934 = vst [vmem:[#allocation41_spill] sm:$0xff] %v1466_v35  ;;  %v1472_v18 = vld [vmem:[%s1262_s20 + $0xb2] sm:$0xff]  ;;  %v320_v52 = vmul.f32 %v1293_v25, %v1451_v40  ;;  %v321_v57 = vmul.f32 %v1293_v25, %v1454_v43  ;;  %v322_v58 = vmul.f32 %v1293_v25, %v1457_v14 }
  0x36   : > { %1935 = vst [vmem:[#allocation42_spill] sm:$0xff] %v1469_v19  ;;  %1936 = vst [vmem:[#allocation43_spill] sm:$0xff] %v1472_v18  ;;  %v323_v59 = vmul.f32 %v1293_v25, %v1460_v15  ;;  %v324_v62 = vmul.f32 %v1293_v25, %v1463_v41  ;;  %v325_v0 = vmul.f32 %v1293_v25, %v1466_v35  ;;  %v1505_v35 = vld [vmem:[%s1262_s20 + $0xc0] sm:$0xff] }
  0x37   : > { %v326_v3 = vmul.f32 %v1293_v25, %v1469_v19  ;;  %v327_v40 = vmul.f32 %v1293_v25, %v1472_v18  ;;  %v328_v43 = vadd.f32 %v312_v20, %v276_v1  ;;  %v329_v39 = vadd.f32 %v313_v45, %v277_v61  ;;  %v1508_v25 = vld [vmem:[%s1262_s20 + $0xc8] sm:$0xff] }
  0x38   : > { %v330_v14 = vadd.f32 %v314_v16, %v278_v60  ;;  %v331_v33 = vadd.f32 %v315_v22, %v279_v2  ;;  %v332_v32 = vadd.f32 %v316_v27, %v280_v54  ;;  %v333_v15 = vadd.f32 %v317_v28, %v281_v53 }
  0x39   : > { %v334_v21 = vadd.f32 %v318_v50, %v282_v8  ;;  %v335_v7 = vadd.f32 %v319_v51, %v283_v48  ;;  %v336_v41 = vadd.f32 %v320_v52, %v284_v34  ;;  %v337_v55 = vadd.f32 %v321_v57, %v285_v38  ;;  %v1950_v51 = vld [vmem:[#allocation22_spill] sm:$0xff]  ;;  %v1951_v57 = vld [vmem:[#allocation23_spill] sm:$0xff] }
  0x3a   : > { %v338_v9 = vadd.f32 %v322_v58, %v286_v4  ;;  %v339_v26 = vadd.f32 %v323_v59, %v287_v5  ;;  %v340_v47 = vadd.f32 %v324_v62, %v288_v44  ;;  %v341_v19 = vadd.f32 %v325_v0, %v289_v10  ;;  %v1937_v10 = vld [vmem:[#allocation28_spill] sm:$0xff]  ;;  %v1953_v0 = vld [vmem:[#allocation25_spill] sm:$0xff] }
  0x3b   : > { %v342_v46 = vadd.f32 %v326_v3, %v290_v11  ;;  %v343_v13 = vadd.f32 %v327_v40, %v291_v12  ;;  %v374_v60 = vmul.f32 %v1271_v17, %v1288_v23  ;;  %v375_v53 = vmul.f32 %v1271_v17, %v1291_v24  ;;  %v1938_v12 = vld [vmem:[#allocation29_spill] sm:$0xff]  ;;  %v1952_v59 = vld [vmem:[#allocation24_spill] sm:$0xff] }
  0x3c   : > { %v376_v48 = vmul.f32 %v1271_v17, %v1302_v29  ;;  %v377_v54 = vmul.f32 %v1271_v17, %v1305_v30  ;;  %v378_v61 = vmul.f32 %v1271_v17, %v1308_v31  ;;  %v379_v1 = vmul.f32 %v1271_v17, %v1313_v36 }
  0x3d   : > { %v380_v2 = vmul.f32 %v1271_v17, %v1316_v37  ;;  %v381_v8 = vmul.f32 %v1505_v35, %v1271_v17  ;;  %v382_v34 = vmul.f32 %v1508_v25, %v1271_v17  ;;  %v383_v38 = vadd.f32 %v1322_v42, %v328_v43 }
  0x3e   : > { %v384_v4 = vadd.f32 %v1335_v49, %v329_v39  ;;  %v385_v5 = vadd.f32 %v1351_v56, %v330_v14  ;;  %v386_v40 = vadd.f32 %v1367_v63, %v331_v33  ;;  %v387_v44 = vadd.f32 %v1383_v6, %v332_v32  ;;  %v1536_v39 = vld [vmem:[%s1262_s20 + $0xc1] sm:$0xff]  ;;  %v1940_v56 = vld [vmem:[#allocation14_spill] sm:$0xff]  ;;  %v1942_v6 = vld [vmem:[#allocation15_spill] sm:$0xff] }
  0x3f   : > { %v388_v11 = vadd.f32 %v1937_v10, %v333_v15  ;;  %v389_v20 = vadd.f32 %v1938_v12, %v334_v21  ;;  %v390_v45 = vadd.f32 %v374_v60, %v335_v7  ;;  %v391_v16 = vadd.f32 %v375_v53, %v336_v41  ;;  %1939 = vst [vmem:[#allocation28_spill] sm:$0xff] %v1536_v39  ;;  %v1941_v63 = vld [vmem:[#allocation10_spill] sm:$0xff]  ;;  %v1943_v14 = vld [vmem:[#allocation16_spill] sm:$0xff] }
  0x40   : > { %v392_v22 = vadd.f32 %v376_v48, %v337_v55  ;;  %v393_v17 = vadd.f32 %v377_v54, %v338_v9  ;;  %v394_v27 = vadd.f32 %v378_v61, %v339_v26  ;;  %v395_v42 = vadd.f32 %v379_v1, %v340_v47  ;;  %v1545_v7 = vld [vmem:[%s1262_s20 + $0xc9] sm:$0xff]  ;;  %v1948_v15 = vld [vmem:[#allocation20_spill] sm:$0xff]  ;;  %v1955_v48 = vld [vmem:[#allocation27_spill] sm:$0xff] }
  0x41   : > { %v396_v43 = vadd.f32 %v380_v2, %v341_v19  ;;  %v397_v28 = vadd.f32 %v381_v8, %v342_v46  ;;  %v398_v49 = vadd.f32 %v382_v34, %v343_v13  ;;  %v419_v33 = vmul.f32 %v1941_v63, %v1940_v56  ;;  %1944 = vst [vmem:[#allocation29_spill] sm:$0xff] %v1545_v7  ;;  %v1945_v55 = vld [vmem:[#allocation17_spill] sm:$0xff]  ;;  %v1946_v47 = vld [vmem:[#allocation18_spill] sm:$0xff]  ;;  %v1947_v13 = vld [vmem:[#allocation19_spill] sm:$0xff] }
  0x42   : > { %v420_v32 = vmul.f32 %v1941_v63, %v1942_v6  ;;  %v421_v21 = vmul.f32 %v1941_v63, %v1943_v14  ;;  %v422_v26 = vmul.f32 %v1941_v63, %v1945_v55  ;;  %v423_v9 = vmul.f32 %v1941_v63, %v1946_v47  ;;  %v1949_v19 = vld [vmem:[#allocation21_spill] sm:$0xff]  ;;  %v1954_v60 = vld [vmem:[#allocation26_spill] sm:$0xff] }
  0x43   : > { %v424_v46 = vmul.f32 %v1941_v63, %v1947_v13  ;;  %v425_v41 = vmul.f32 %v1941_v63, %v1948_v15  ;;  %v426_v50 = vmul.f32 %v1941_v63, %v1949_v19  ;;  %v427_v52 = vmul.f32 %v1941_v63, %v1950_v51  ;;  %v1574_v13 = vld [vmem:[%s1262_s20 + $0xc2] sm:$0xff] }
  0x44   : > { %v428_v58 = vmul.f32 %v1941_v63, %v1951_v57  ;;  %v429_v62 = vmul.f32 %v1941_v63, %v1952_v59  ;;  %v430_v3 = vmul.f32 %v1941_v63, %v1953_v0  ;;  %v431_v53 = vmul.f32 %v1941_v63, %v1954_v60  ;;  %1956 = vst [vmem:[#allocation14_spill] sm:$0xff] %v1574_v13 }
  0x45   : > { %v432_v54 = vmul.f32 %v1941_v63, %v1955_v48  ;;  %v433_v61 = vmul.f32 %v1536_v39, %v1941_v63  ;;  %v434_v1 = vmul.f32 %v1545_v7, %v1941_v63  ;;  %v435_v2 = vadd.f32 %v419_v33, %v383_v38  ;;  %v1957_v38 = vld [vmem:[#allocation30_spill] sm:$0xff]  ;;  %v1958_v63 = vld [vmem:[#allocation11_spill] sm:$0xff] }
  0x46   : > { %v436_v8 = vadd.f32 %v420_v32, %v384_v4  ;;  %v437_v34 = vadd.f32 %v421_v21, %v385_v5  ;;  %v438_v10 = vadd.f32 %v422_v26, %v386_v40  ;;  %v439_v12 = vadd.f32 %v423_v9, %v387_v44  ;;  %v1959_v5 = vld [vmem:[#allocation31_spill] sm:$0xff]  ;;  %v1960_v44 = vld [vmem:[#allocation32_spill] sm:$0xff]  ;;  %v1966_v32 = vld [vmem:[#allocation38_spill] sm:$0xff] }
  0x47   : > { %v440_v56 = vadd.f32 %v424_v46, %v388_v11  ;;  %v441_v6 = vadd.f32 %v425_v41, %v389_v20  ;;  %v442_v0 = vadd.f32 %v426_v50, %v390_v45  ;;  %v443_v60 = vadd.f32 %v427_v52, %v391_v16  ;;  %v1583_v20 = vld [vmem:[%s1262_s20 + $0xca] sm:$0xff]  ;;  %v1967_v26 = vld [vmem:[#allocation39_spill] sm:$0xff]  ;;  %v1968_v46 = vld [vmem:[#allocation40_spill] sm:$0xff] }
  0x48   : > { %v444_v59 = vadd.f32 %v428_v58, %v392_v22  ;;  %v445_v57 = vadd.f32 %v429_v62, %v393_v17  ;;  %v446_v48 = vadd.f32 %v430_v3, %v394_v27  ;;  %v447_v51 = vadd.f32 %v431_v53, %v395_v42  ;;  %v1961_v45 = vld [vmem:[#allocation33_spill] sm:$0xff]  ;;  %v1962_v22 = vld [vmem:[#allocation34_spill] sm:$0xff]  ;;  %v1963_v27 = vld [vmem:[#allocation35_spill] sm:$0xff] }
  0x49   : > { %v448_v19 = vadd.f32 %v432_v54, %v396_v43  ;;  %v449_v39 = vadd.f32 %v433_v61, %v397_v28  ;;  %v450_v15 = vadd.f32 %v434_v1, %v398_v49  ;;  %v471_v4 = vmul.f32 %v1958_v63, %v1957_v38  ;;  %v1964_v43 = vld [vmem:[#allocation36_spill] sm:$0xff]  ;;  %v1965_v49 = vld [vmem:[#allocation37_spill] sm:$0xff]  ;;  %v1970_v58 = vld [vmem:[#allocation42_spill] sm:$0xff] }
  0x4a   : > { %v472_v40 = vmul.f32 %v1958_v63, %v1959_v5  ;;  %v473_v11 = vmul.f32 %v1958_v63, %v1960_v44  ;;  %v474_v16 = vmul.f32 %v1958_v63, %v1961_v45  ;;  %v475_v17 = vmul.f32 %v1958_v63, %v1962_v22  ;;  %v1969_v50 = vld [vmem:[#allocation41_spill] sm:$0xff]  ;;  %v952_v45 = vld [vmem:[%s1262_s20 + $0xd8] sm:$0xff] }
  0x4b   : > { %v476_v42 = vmul.f32 %v1958_v63, %v1963_v27  ;;  %v477_v28 = vmul.f32 %v1958_v63, %v1964_v43  ;;  %v478_v33 = vmul.f32 %v1958_v63, %v1965_v49  ;;  %v479_v21 = vmul.f32 %v1958_v63, %v1966_v32 }
  0x4c   : > { %v480_v9 = vmul.f32 %v1958_v63, %v1967_v26  ;;  %v481_v41 = vmul.f32 %v1958_v63, %v1968_v46  ;;  %v482_v52 = vmul.f32 %v1958_v63, %v1969_v50  ;;  %v483_v62 = vmul.f32 %v1958_v63, %v1970_v58 }
  0x4d   : > { %v484_v3 = vmul.f32 %v1958_v63, %v1472_v18  ;;  %v485_v53 = vmul.f32 %v1574_v13, %v1958_v63  ;;  %v486_v54 = vmul.f32 %v1583_v20, %v1958_v63  ;;  %v487_v61 = vadd.f32 %v471_v4, %v435_v2  ;;  %v1971_v63 = vld [vmem:[#allocation5_spill] sm:$0xff]  ;;  %v1972_v2 = vld [vmem:[#allocation12_spill] sm:$0xff] }
  0x4e   : > { %v488_v1 = vadd.f32 %v472_v40, %v436_v8  ;;  %v489_v38 = vadd.f32 %v473_v11, %v437_v34  ;;  %v490_v5 = vadd.f32 %v474_v16, %v438_v10  ;;  %v491_v46 = vadd.f32 %v475_v17, %v439_v12  ;;  %v1973_v8 = vld [vmem:[#allocation6_spill] sm:$0xff]  ;;  %v1974_v10 = vld [vmem:[#allocation7_spill] sm:$0xff] }
  0x4f   : > { %v492_v26 = vadd.f32 %v476_v42, %v440_v56  ;;  %v493_v50 = vadd.f32 %v477_v28, %v441_v6  ;;  %v494_v32 = vadd.f32 %v478_v33, %v442_v0  ;;  %v495_v7 = vadd.f32 %v479_v21, %v443_v60  ;;  %v1975_v0 = vld [vmem:[#allocation8_spill] sm:$0xff] }
  0x50   : > { %v496_v58 = vadd.f32 %v480_v9, %v444_v59  ;;  %v497_v49 = vadd.f32 %v481_v41, %v445_v57  ;;  %v498_v18 = vadd.f32 %v482_v52, %v446_v48  ;;  %v499_v43 = vadd.f32 %v483_v62, %v447_v51  ;;  %v1976_v59 = vld [vmem:[#allocation9_spill] sm:$0xff] }
  0x51   : > { %v500_v27 = vadd.f32 %v484_v3, %v448_v19  ;;  %v501_v13 = vadd.f32 %v485_v53, %v449_v39  ;;  %v502_v22 = vadd.f32 %v486_v54, %v450_v15  ;;  %v526_v4 = vmul.f32 %v1972_v2, %v1971_v63  ;;  %v953_v19 = vld [vmem:[%s1262_s20 + $0xe0] sm:$0xff]  ;;  %v1983_v63 = vld [vmem:[#allocation22_spill] sm:$0xff] }
  0x52   : > { %v527_v34 = vmul.f32 %v1972_v2, %v1973_v8  ;;  %v528_v12 = vmul.f32 %v1972_v2, %v1974_v10  ;;  %v529_v60 = vmul.f32 %v1972_v2, %v1975_v0  ;;  %v530_v57 = vmul.f32 %v1972_v2, %v1976_v59  ;;  %v1979_v3 = vld [vmem:[#allocation20_spill] sm:$0xff]  ;;  %v1984_v8 = vld [vmem:[#allocation35_spill] sm:$0xff] }
  0x53   : > { %v531_v39 = vmul.f32 %v1972_v2, %v1288_v23  ;;  %v532_v15 = vmul.f32 %v1972_v2, %v1291_v24  ;;  %v533_v51 = vmul.f32 %v1972_v2, %v1302_v29  ;;  %v534_v48 = vmul.f32 %v1972_v2, %v1305_v30  ;;  %v1977_v30 = vld [vmem:[#allocation13_spill] sm:$0xff]  ;;  %v1985_v10 = vld [vmem:[#allocation23_spill] sm:$0xff]  ;;  %v1986_v0 = vld [vmem:[#allocation24_spill] sm:$0xff] }
  0x54   : > { %v535_v56 = vmul.f32 %v1972_v2, %v1308_v31  ;;  %v536_v6 = vmul.f32 %v1972_v2, %v1313_v36  ;;  %v537_v40 = vmul.f32 %v1972_v2, %v1316_v37  ;;  %v538_v23 = vmul.f32 %v1505_v35, %v1972_v2  ;;  %v969_v59 = vld [vmem:[%s1262_s20 + $0xe1] sm:$0xff] }
  0x55   : > { %v539_v24 = vmul.f32 %v1508_v25, %v1972_v2  ;;  %v540_v29 = vmul.f32 %v952_v45, %v1972_v2  ;;  %v542_v11 = vadd.f32 %v526_v4, %v487_v61  ;;  %v543_v16 = vadd.f32 %v527_v34, %v488_v1  ;;  %v1652_v25 = vld [vmem:[%s1830_s1 + $0x8] ss:$0 sm:$0xff]  ;;  %v968_v34 = vld [vmem:[%s1262_s20 + $0xd9] sm:$0xff] }
  0x56   : > { %v578_v17 = vmul.f32 %v1977_v30, %v1943_v14  ;;  %v579_v31 = vmul.f32 %v1977_v30, %v1945_v55  ;;  %v541_v36 = vmul.f32 %v953_v19, %v1972_v2  ;;  %v544_v42 = vadd.f32 %v528_v12, %v489_v38  ;;  %v1978_v55 = vld [vmem:[#allocation19_spill] sm:$0xff]  ;;  %v1982_v1 = vld [vmem:[#allocation21_spill] sm:$0xff] }
  0x57   : > { %v545_v37 = vadd.f32 %v529_v60, %v490_v5  ;;  %v580_v35 = vmul.f32 %v1977_v30, %v1946_v47  ;;  %v546_v45 = vadd.f32 %v530_v57, %v491_v46  ;;  %v547_v28 = vadd.f32 %v531_v39, %v492_v26  ;;  %v1980_v46 = vld [vmem:[#allocation33_spill] sm:$0xff] }
  0x58   : > { %v548_v33 = vadd.f32 %v532_v15, %v493_v50  ;;  %v549_v21 = vadd.f32 %v533_v51, %v494_v32  ;;  %v550_v14 = vadd.f32 %v534_v48, %v495_v7  ;;  %v551_v9 = vadd.f32 %v535_v56, %v496_v58  ;;  %v1989_v51 = vld [vmem:[#allocation26_spill] sm:$0xff]  ;;  %v1990_v56 = vld [vmem:[#allocation27_spill] sm:$0xff] }
  0x59   : > { %v552_v41 = vadd.f32 %v536_v6, %v497_v49  ;;  %v581_v52 = vmul.f32 %v1977_v30, %v1978_v55  ;;  %v553_v62 = vadd.f32 %v537_v40, %v498_v18  ;;  %v582_v53 = vmul.f32 %v1977_v30, %v1979_v3  ;;  %v1981_v49 = vld [vmem:[#allocation34_spill] sm:$0xff] }
  0x5a   : > { %v594_v47 = vadd.f32 %v578_v17, %v542_v11  ;;  %v595_v54 = vadd.f32 %v579_v31, %v543_v16  ;;  %v596_v61 = vadd.f32 %v580_v35, %v544_v42  ;;  %v630_v26 = vmul.f32 %v1652_v25, %v1960_v44  ;;  %v1992_v11 = vld [vmem:[#allocation28_spill] sm:$0xff]  ;;  %v1993_v17 = vld [vmem:[#allocation29_spill] sm:$0xff] }
  0x5b   : > { %v631_v7 = vmul.f32 %v1652_v25, %v1980_v46  ;;  %v632_v32 = vmul.f32 %v1652_v25, %v1981_v49  ;;  %v554_v50 = vadd.f32 %v538_v23, %v499_v43  ;;  %v555_v18 = vadd.f32 %v539_v24, %v500_v27  ;;  %v1987_v27 = vld [vmem:[#allocation25_spill] sm:$0xff] }
  0x5c   : > { %v556_v58 = vadd.f32 %v540_v29, %v501_v13  ;;  %v583_v38 = vmul.f32 %v1977_v30, %v1982_v1  ;;  %v557_v5 = vadd.f32 %v541_v36, %v502_v22  ;;  %v584_v2 = vmul.f32 %v1977_v30, %v1983_v63  ;;  %v1988_v22 = vld [vmem:[#allocation36_spill] sm:$0xff]  ;;  %v1991_v23 = vld [vmem:[#allocation37_spill] sm:$0xff] }
  0x5d   : > { %v597_v4 = vadd.f32 %v581_v52, %v545_v37  ;;  %v633_v44 = vmul.f32 %v1652_v25, %v1984_v8  ;;  %v585_v12 = vmul.f32 %v1977_v30, %v1985_v10  ;;  %v586_v43 = vmul.f32 %v1977_v30, %v1986_v0  ;;  %v1689_v29 = vld [vmem:[%s1831_s2] ss:$0 sm:$0xff]  ;;  %v1997_v0 = vld [vmem:[#allocation41_spill] sm:$0xff] }
  0x5e   : > { %v587_v13 = vmul.f32 %v1977_v30, %v1987_v27  ;;  %v598_v60 = vadd.f32 %v582_v53, %v546_v45  ;;  %v634_v57 = vmul.f32 %v1652_v25, %v1988_v22  ;;  %v646_v39 = vadd.f32 %v630_v26, %v594_v47  ;;  %v1995_v26 = vld [vmem:[#allocation39_spill] sm:$0xff]  ;;  %v1998_v22 = vld [vmem:[#allocation42_spill] sm:$0xff] }
  0x5f   : > { %v647_v15 = vadd.f32 %v631_v7, %v595_v54  ;;  %v648_v19 = vadd.f32 %v632_v32, %v596_v61  ;;  %v588_v48 = vmul.f32 %v1977_v30, %v1989_v51  ;;  %v589_v6 = vmul.f32 %v1977_v30, %v1990_v56 }
  0x60   : > { %v599_v40 = vadd.f32 %v583_v38, %v547_v28  ;;  %v635_v24 = vmul.f32 %v1652_v25, %v1991_v23  ;;  %v590_v16 = vmul.f32 %v1992_v11, %v1977_v30  ;;  %v591_v31 = vmul.f32 %v1993_v17, %v1977_v30  ;;  %v1994_v28 = vld [vmem:[#allocation38_spill] sm:$0xff] }
  0x61   : > { %v592_v36 = vmul.f32 %v968_v34, %v1977_v30  ;;  %v649_v42 = vadd.f32 %v633_v44, %v597_v4  ;;  %v593_v37 = vmul.f32 %v969_v59, %v1977_v30  ;;  %v600_v35 = vadd.f32 %v584_v2, %v548_v33  ;;  %v1996_v2 = vld [vmem:[#allocation40_spill] sm:$0xff] }
  0x62   : > { %v601_v45 = vadd.f32 %v585_v12, %v549_v21  ;;  %v636_v55 = vmul.f32 %v1652_v25, %v1994_v28  ;;  %v650_v52 = vadd.f32 %v634_v57, %v598_v60  ;;  %v669_v3 = vadd.f32 %v1689_v29, %v646_v39  ;;  %v1999_v39 = vld [vmem:[#allocation43_spill] sm:$0xff] }
  0x63   : > { %v670_v53 = vadd.f32 %v1689_v29, %v647_v15  ;;  %v671_v47 = vadd.f32 %v1689_v29, %v648_v19  ;;  %v602_v54 = vadd.f32 %v586_v43, %v550_v14  ;;  %v603_v61 = vadd.f32 %v587_v13, %v551_v9  ;;  %v2000_v19 = vld [vmem:[#allocation14_spill] sm:$0xff] }
  0x64   : > { %v637_v46 = vmul.f32 %v1652_v25, %v1995_v26  ;;  %v651_v7 = vadd.f32 %v635_v24, %v599_v40  ;;  %v672_v30 = vadd.f32 %v1689_v29, %v649_v42  ;;  %v686_v33 = vsel %vm685_vm0, %v669_v3, 0.0 }
  0x65   : > { %v687_v21 = vsel %vm685_vm0, %v670_v53, 0.0  ;;  %v689_v49 = vsel %vm685_vm0, %v671_v47, 0.0  ;;  %v604_v32 = vadd.f32 %v588_v48, %v552_v41  ;;  %v605_v1 = vadd.f32 %v589_v6, %v553_v62 }
  0x66   : > { %v606_v38 = vadd.f32 %v590_v16, %v554_v50  ;;  %v688_v63 = vadd.f32 %v687_v21, %v686_v33  ;;  %v638_v14 = vmul.f32 %v1652_v25, %v1996_v2  ;;  %v652_v9 = vadd.f32 %v636_v55, %v600_v35 }
  0x67   : > { %v673_v4 = vadd.f32 %v1689_v29, %v650_v52  ;;  %v691_v8 = vsel %vm685_vm0, %v672_v30, 0.0  ;;  %v607_v44 = vadd.f32 %v591_v31, %v555_v18  ;;  %v608_v34 = vadd.f32 %v592_v36, %v556_v58  ;;  %v984_v36 = vld [vmem:[%s1262_s20 + $0xda] sm:$0xff] }
  0x68   : > { %v1712_v10 = vadd.f32 %v593_v37, %v557_v5  ;;  %v690_v12 = vadd.f32 %v689_v49, %v688_v63  ;;  %v639_v43 = vmul.f32 %v1652_v25, %v1997_v0  ;;  %v653_v41 = vadd.f32 %v637_v46, %v601_v45 }
  0x69   : > { %v674_v62 = vadd.f32 %v1689_v29, %v651_v7  ;;  %v693_v50 = vsel %vm685_vm0, %v673_v4, 0.0  ;;  %v725_v13 = vmul.f32 %v669_v3, %v669_v3  ;;  %v726_v60 = vmul.f32 %v670_v53, %v670_v53  ;;  %v985_v53 = vld [vmem:[%s1262_s20 + $0xe2] sm:$0xff]  ;;  %s1775_s20 = scalar_lea.hbm %s1832_s3, %s990_s8 }
  0x6a   : > { %v692_v27 = vadd.f32 %v691_v8, %v690_v12  ;;  %v727_v59 = vmul.f32 %v671_v47, %v671_v47  ;;  %v640_v57 = vmul.f32 %v1652_v25, %v1998_v22  ;;  %v654_v18 = vadd.f32 %v638_v14, %v602_v54 }
  0x6b   : > { %v675_v58 = vadd.f32 %v1689_v29, %v652_v9  ;;  %v695_v5 = vsel %vm685_vm0, %v674_v62, 0.0  ;;  %v641_v15 = vmul.f32 %v1652_v25, %v1999_v39  ;;  %v642_v51 = vmul.f32 %v1652_v25, %v2000_v19 }
  0x6c   : > { %v694_v48 = vadd.f32 %v693_v50, %v692_v27  ;;  %v728_v56 = vmul.f32 %v672_v30, %v672_v30  ;;  %v655_v6 = vadd.f32 %v639_v43, %v603_v61  ;;  %v676_v40 = vadd.f32 %v1689_v29, %v653_v41 }
  0x6d   : > { %v697_v23 = vsel %vm685_vm0, %v675_v58, 0.0  ;;  %v729_v24 = vmul.f32 %v673_v4, %v673_v4  ;;  %v741_v16 = vsel %vm685_vm0, %v725_v13, 0.0  ;;  %v742_v17 = vsel %vm685_vm0, %v726_v60, 0.0 }
  0x6e   : > { %v696_v11 = vadd.f32 %v695_v5, %v694_v48  ;;  %v744_v31 = vsel %vm685_vm0, %v727_v59, 0.0  ;;  %v656_v42 = vadd.f32 %v640_v57, %v604_v32  ;;  %v677_v37 = vadd.f32 %v1689_v29, %v654_v18 }
  0x6f   : > { %v699_v35 = vsel %vm685_vm0, %v676_v40, 0.0  ;;  %v743_v45 = vadd.f32 %v742_v17, %v741_v16  ;;  %v643_v28 = vmul.f32 %v1652_v25, %v1583_v20  ;;  %v730_v52 = vmul.f32 %v674_v62, %v674_v62 }
  0x70   : > { %v698_v55 = vadd.f32 %v697_v23, %v696_v11  ;;  %v746_v3 = vsel %vm685_vm0, %v728_v56, 0.0  ;;  %v657_v47 = vadd.f32 %v641_v15, %v605_v1  ;;  %v678_v54 = vadd.f32 %v1689_v29, %v655_v6 }
  0x71   : > { %v701_v61 = vsel %vm685_vm0, %v677_v37, 0.0  ;;  %v745_v26 = vadd.f32 %v744_v31, %v743_v45  ;;  %v644_v46 = vmul.f32 %v1652_v25, %v984_v36  ;;  %v731_v30 = vmul.f32 %v675_v58, %v675_v58 }
  0x72   : > { %v700_v7 = vadd.f32 %v699_v35, %v698_v55  ;;  %v748_v33 = vsel %vm685_vm0, %v729_v24, 0.0  ;;  %v658_v21 = vadd.f32 %v642_v51, %v606_v38  ;;  %v679_v20 = vadd.f32 %v1689_v29, %v656_v42 }
  0x73   : > { %v703_v49 = vsel %vm685_vm0, %v678_v54, 0.0  ;;  %v747_v32 = vadd.f32 %v746_v3, %v745_v26  ;;  %v645_v63 = vmul.f32 %v1652_v25, %v985_v53  ;;  %v732_v2 = vmul.f32 %v676_v40, %v676_v40 }
  0x74   : > { %v702_v1 = vadd.f32 %v701_v61, %v700_v7  ;;  %v750_v14 = vsel %vm685_vm0, %v730_v52, 0.0  ;;  %v659_v9 = vadd.f32 %v643_v28, %v607_v44  ;;  %v680_v4 = vadd.f32 %v1689_v29, %v657_v47 }
  0x75   : > { %v705_v8 = vsel %vm685_vm0, %v679_v20, 0.0  ;;  %v749_v12 = vadd.f32 %v748_v33, %v747_v32  ;;  %v733_v43 = vmul.f32 %v677_v37, %v677_v37  ;;  %v752_v38 = vsel %vm685_vm0, %v731_v30, 0.0 }
  0x76   : > { %v704_v0 = vadd.f32 %v703_v49, %v702_v1  ;;  %v660_v41 = vadd.f32 %v644_v46, %v608_v34  ;;  %v681_v62 = vadd.f32 %v1689_v29, %v658_v21  ;;  %v707_v50 = vsel %vm685_vm0, %v680_v4, 0.0 }
  0x77   : > { %v751_v25 = vadd.f32 %v750_v14, %v749_v12  ;;  %v734_v13 = vmul.f32 %v678_v54, %v678_v54  ;;  %v754_v60 = vsel %vm685_vm0, %v732_v2, 0.0  ;;  %v661_v44 = vadd.f32 %v645_v63, %v1712_v10 }
  0x78   : > { %v706_v27 = vadd.f32 %v705_v8, %v704_v0  ;;  %v682_v59 = vadd.f32 %v1689_v29, %v659_v9  ;;  %v709_v22 = vsel %vm685_vm0, %v681_v62, 0.0  ;;  %v735_v58 = vmul.f32 %v679_v20, %v679_v20 }
  0x79   : > { %v753_v57 = vadd.f32 %v752_v38, %v751_v25  ;;  %v756_v34 = vsel %vm685_vm0, %v733_v43, 0.0  ;;  %v683_v5 = vadd.f32 %v1689_v29, %v660_v41  ;;  %v736_v51 = vmul.f32 %v680_v4, %v680_v4 }
  0x7a   : > { %v708_v18 = vadd.f32 %v707_v50, %v706_v27  ;;  %v711_v39 = vsel %vm685_vm0, %v682_v59, 0.0  ;;  %v758_v48 = vsel %vm685_vm0, %v734_v13, 0.0  ;;  %v684_v10 = vadd.f32 %v1689_v29, %v661_v44 }
  0x7b   : > { %v755_v15 = vadd.f32 %v754_v60, %v753_v57  ;;  %v713_v56 = vsel %vm685_vm0, %v683_v5, 0.0  ;;  %v737_v23 = vmul.f32 %v681_v62, %v681_v62  ;;  %v760_v24 = vsel %vm685_vm0, %v735_v58, 0.0 }
  0x7c   : > { %v710_v19 = vadd.f32 %v709_v22, %v708_v18  ;;  %v715_v11 = vsel %vm685_vm0, %v684_v10, 0.0  ;;  %v738_v31 = vmul.f32 %v682_v59, %v682_v59  ;;  %v762_v36 = vsel %vm685_vm0, %v736_v51, 0.0 }
  0x7d   : > { %v757_v6 = vadd.f32 %v756_v34, %v755_v15  ;;  %v739_v35 = vmul.f32 %v683_v5, %v683_v5  ;;  %v764_v29 = vsel %vm685_vm0, %v737_v23, 0.0  ;;  %v740_v55 = vmul.f32 %v684_v10, %v684_v10 }
  0x7e   : > { %v712_v40 = vadd.f32 %v711_v39, %v710_v19  ;;  %v766_v52 = vsel %vm685_vm0, %v738_v31, 0.0 }
  0x7f   : > { %v759_v16 = vadd.f32 %v758_v48, %v757_v6  ;;  %v768_v47 = vsel %vm685_vm0, %v739_v35, 0.0  ;;  %v770_v26 = vsel %vm685_vm0, %v740_v55, 0.0 }
  0x80   : > { %v714_v17 = vadd.f32 %v713_v56, %v712_v40 }
  0x81   : > { %v761_v42 = vadd.f32 %v760_v24, %v759_v16 }
  0x82   : > { %v716_v37 = vadd.f32 %v715_v11, %v714_v17 }
  0x83   : > { %v763_v45 = vadd.f32 %v762_v36, %v761_v42 }
  0x84   : > { %v717_v28 = vrot.slane %v716_v37, 4 }
  0x85   : > { %v765_v3 = vadd.f32 %v764_v29, %v763_v45 }
  0x86   : > { %v718_v53 = vadd.f32 %v717_v28, %v716_v37 }
  0x87   : > { %v767_v54 = vadd.f32 %v766_v52, %v765_v3 }
  0x88   : > { %v719_v61 = vrot.slane %v718_v53, 2 }
  0x89   : > { %v769_v46 = vadd.f32 %v768_v47, %v767_v54 }
  0x8a   : > { %v720_v7 = vadd.f32 %v719_v61, %v718_v53 }
  0x8b   : > { %v771_v30 = vadd.f32 %v770_v26, %v769_v46 }
  0x8c   : > { %v721_v33 = vrot.slane %v720_v7, 1 }
  0x8d   : > { %v772_v21 = vrot.slane %v771_v30, 4 }
  0x8e   : > { %v722_v20 = vadd.f32 %v721_v33, %v720_v7 }
  0x8f   : > { %v773_v49 = vadd.f32 %v772_v21, %v771_v30 }
  0x90   : > { %724 = vst.msk [vmem:[%s177_s6] sm:$0x1] %vm723_vm1, %v722_v20 }
  0x91   : > { %v774_v32 = vrot.slane %v773_v49, 2 }
  0x93   : > { %v775_v63 = vadd.f32 %v774_v32, %v773_v49 }
  0x95   : > { %v776_v1 = vrot.slane %v775_v63, 1 }
  0x97   : > { %v777_v2 = vadd.f32 %v776_v1, %v775_v63 }
  0x99   : > { %778 = vst.msk [vmem:[%s177_s6 + $0x1] sm:$0x1] %vm723_vm1, %v777_v2 }
  0x9a   : > { %1078 = shalt.err (!%p1075_p6)
}
  0x9b   : > { %s1079_s28 = scalar_lea.hbm %s1775_s20, 32  ;;  %s1083_s5 = scalar_lea.hbm %s1832_s3, 128 }
  0x9c   : > { %p1080_p7 = scmp.ne.s32.totalorder %s1775_s20, %s1079_s28  ;;  %p1084_p11 = scmp.lt.u32.totalorder %s1775_s20, %s1832_s3 }
  0x9d   : > { %p1085_p12 = scmp.lt.u32.totalorder %s1083_s5, %s1079_s28  ;;  %p1087_p0 = scmp.lt.u32.totalorder %s1079_s28, %s1775_s20 }
  0x9e   : > { %p1081_p9 = pnand %p1080_p7, %p1233_p3 }
  0x9f   : > { %p1086_p13 = por %p1085_p12, %p1084_p11 }
  0xa0   : > { %p1082_p10 = pneg %p1081_p9 }
  0xa1   : > { %p1088_p1 = por %p1087_p0, %p1086_p13 }
  0xa3   : > { %p1089_p2 = pnand %p1088_p1, %p1082_p10 }
  0xa5   : > { %1092 = shalt.err (!%p1089_p2)
}
  0xa6   : > { %994 = dma.vmem_to_hbm [thread:$0]  (%p1233_p3), %s1777_s9, 32, %s1775_s20, %s780_s16  }
  0xa7 PF: > { %p1000_p4 = scmp.ge.s32.totalorder %s1159_s19, 2  ;;  %s807_s8 = sand.u32 1, %s1131_s12  }
  0xa8   : > { %s808_s10 = scalar_lea.sflag [#allocation3], %s807_s8 }
  0xa9   : > { %p997_p5 = pnand %p1000_p4, %p1242_p8 }
  0xab   : > { %1126 = dma.done.wait (!%p997_p5), %s808_s10, 32  }
  0xac   : > { %1128 = vsyncadd (!%p997_p5), %s808_s10, 4294967264  ;;  %s16_s19 = sadd.s32 1, %s1159_s19   ;;  %s2001_s12 = smov %s1135_s13 }
  0xad   : > { %p13_p6 = scmp.ge.s32.totalorder %s16_s19, 6   ;;  %s2002_s13 = smov %s1139_s14 }
  0xae   : > { %s2003_s14 = smov %s1251_s30  ;;  %s2004_s15 = smov %s1151_s17 }
  0xaf   : > { %s2005_s16 = smov %s1155_s18  ;;  %s2006_s17 = smov %s2009_s22 }
  0xb0   : > { %s2007_s18 = smov %s2013_s23  ;;  %15 = sbr.rel (!%p13_p6) target bundleno = 5 (0x5), region = 70 }
  0xb7   :  { %813 = vsyncpa [#allocation3], 1 }
  0xb8   :  { %815 = vsyncpa [#allocation3 + $0x1], 1 }

</bundles_post_ra>
